<compile_context>
chip_gen: v5e
topology: v5e:2x2
jax: 0.10.0
libtpu: 0.0.40
codegen_flags: <defaults>
</compile_context>

<pallas_src>
import jax
import jax.numpy as jnp
from jax.experimental import pallas as pl
from jax.experimental.pallas import tpu as pltpu

LANE = 128


# ----------------------------------------------------------------------------
# Pallas kernel: trivial identity (pass-through). This is the only "compute"
# that exists, since the reference forward body is empty.
# ----------------------------------------------------------------------------
def _identity_kernel(x_ref, o_ref):
    o_ref[...] = x_ref[...]


def _sublane(dtype) -> int:
    # Sublane packing rows: 8 for 4-byte dtypes, 16 for 2-byte, 32 for 1-byte.
    itemsize = jnp.dtype(dtype).itemsize
    return max(8, 32 // max(itemsize, 1))


def pallas_identity(
    x: jax.Array,
    *,
    block_rows: int = 1024,
    small_bytes_limit: int = 8 * 1024 * 1024,
) -> jax.Array:
    """Copy `x` through VMEM.

    Small inputs (total bytes <= small_bytes_limit): single whole-array block,
    no grid — no per-step pipeline overhead, in + out VMEM buffers stay well
    under every generation's scoped VMEM limit (<= 16 MiB total at the 8 MiB
    default threshold).

    Large inputs: 2-D (rows x cols) grid with lane-dense column tiles and a
    6 MiB per-block budget (24 MiB double-buffered working set — safe on v7x's
    32 MiB scoped default, plenty of room on v5e/v6e).
    """
    assert x.ndim == 2, "demo identity kernel expects a 2-D array"
    rows, cols = x.shape
    itemsize = jnp.dtype(x.dtype).itemsize
    total_bytes = rows * cols * itemsize

    # ---------------- small path: single whole-array block, no grid ----------
    if total_bytes <= small_bytes_limit:
        return pl.pallas_call(
            _identity_kernel,
            out_shape=jax.ShapeDtypeStruct((rows, cols), x.dtype),
            in_specs=[pl.BlockSpec(memory_space=pltpu.MemorySpace.VMEM)],
            out_specs=pl.BlockSpec(memory_space=pltpu.MemorySpace.VMEM),
            input_output_aliases={0: 0},
        )(x)

    # ---------------- tiled streaming path (2-D grid) ------------------------
    sublane = _sublane(x.dtype)

    # Pad columns to a lane multiple so stores are unmasked (lane-dense).
    pad_cols = (-cols) % LANE
    xp = jnp.pad(x, ((0, 0), (0, pad_cols))) if pad_cols else x
    pcols = cols + pad_cols

    # Per-block byte budget: 6 MiB. Double-buffered in + out = 4 blocks
    # = 24 MiB, with headroom under v7x's 32 MiB scoped default for Mosaic
    # internal scratch. (v5e/v6e have 128 MiB physical; this is conservative.)
    block_budget = 6 * 1024 * 1024

    # Column tile: as wide as possible while leaving room for >= one sublane
    # group of rows; always a multiple of 128 lanes.
    max_cols_by_vmem = max(LANE, ((block_budget // (sublane * itemsize)) // LANE) * LANE)
    tile_cols = min(pcols, max_cols_by_vmem)

    # Row tile: fill the remaining budget, multiple of the sublane packing.
    bytes_per_tile_row = tile_cols * itemsize
    max_rows_by_vmem = max(sublane, ((block_budget // bytes_per_tile_row) // sublane) * sublane)
    tile_rows = min(block_rows, max_rows_by_vmem)
    tile_rows = max(sublane, (tile_rows // sublane) * sublane)

    grid = (pl.cdiv(rows, tile_rows), pl.cdiv(pcols, tile_cols))

    out = pl.pallas_call(
        _identity_kernel,
        out_shape=jax.ShapeDtypeStruct((rows, pcols), x.dtype),
        grid=grid,
        in_specs=[pl.BlockSpec((tile_rows, tile_cols), lambda i, j: (i, j))],
        out_specs=pl.BlockSpec((tile_rows, tile_cols), lambda i, j: (i, j)),
        input_output_aliases={0: 0},
        cost_estimate=pl.CostEstimate(
            flops=0,
            transcendentals=0,
            bytes_accessed=2 * rows * pcols * itemsize,
        ),
        compiler_params=pltpu.CompilerParams(
            dimension_semantics=("parallel", "parallel"),
            vmem_limit_bytes=32 * 1024 * 1024,
        ),
    )(xp)

    return out[:, :cols] if pad_cols else out


# ----------------------------------------------------------------------------
# Transformer "module" equivalent
# ----------------------------------------------------------------------------
class TransformerPallas:
    """JAX/Pallas equivalent of the (empty) reference Transformer module."""

    def __init__(self):
        # Reference __init__ is `pass`: no parameters to initialize.
        pass

    def forward(self):
        # Reference forward is `pass`: takes no inputs, returns None.
        return None

    __call__ = forward


def transformer_forward():
    return TransformerPallas().forward()


if __name__ == "__main__":
    # Deterministic small input for the demo identity kernel (the Transformer
    # forward itself implies no inputs).
    key = jax.random.PRNGKey(0)
    x_small = jax.random.normal(key, (16, 128), dtype=jnp.float32)
    expected_small = jax.device_get(x_small)  # host copy (safe vs. aliasing)

    y_small = pallas_identity(x_small)
    jax.block_until_ready(y_small)
    assert y_small.shape == (16, 128) and y_small.dtype == jnp.float32
    assert bool(jnp.array_equal(y_small, expected_small))

    # Exercise the tiled 2-D-grid path (including column padding to a lane
    # multiple) by disabling the small-array fast path. Kept small so the
    # demo stays fast; the tiling math is identical at large sizes.
    x_big = jax.random.normal(jax.random.PRNGKey(1), (1024, 200), jnp.float32)
    expected_big = jax.device_get(x_big)
    y_big = pallas_identity(x_big, small_bytes_limit=0)
    jax.block_until_ready(y_big)
    assert y_big.shape == (1024, 200) and y_big.dtype == jnp.float32
    assert bool(jnp.array_equal(y_big, expected_big))

    # Run the (empty) Transformer forward — must return None, like PyTorch.
    out = transformer_forward()
    assert out is None

    print("KERNEL_OK")
</pallas_src>

<mosaic_0001>
module attributes {stable_mosaic.version = 11 : i64} {
  func.func @_identity_kernel(%arg0: memref<16x128xf32, #tpu.memory_space<vmem>>, %arg1: memref<16x128xf32, #tpu.memory_space<vmem>>) attributes {dimension_semantics = [], scalar_prefetch = 0 : i64, scratch_operands = 0 : i64, tpu.core_type = #tpu.core_type<tc>} {
    %c0 = arith.constant 0 : index
    %c0_0 = arith.constant 0 : index
    %0 = vector.load %arg0[%c0, %c0_0] : memref<16x128xf32, #tpu.memory_space<vmem>>, vector<16x128xf32>
    %c0_1 = arith.constant 0 : index
    %c0_2 = arith.constant 0 : index
    %1 = vector.load %arg1[%c0_1, %c0_2] : memref<16x128xf32, #tpu.memory_space<vmem>>, vector<16x128xf32>
    tpu.vector_store %arg1[%c0_1, %c0_2], %0 {strides = array<i32>} : memref<16x128xf32, #tpu.memory_space<vmem>>, vector<16x128xf32>,
    return
  }
}

</mosaic_0001>

<bundles_post_ra>
// kernel: tpu_custom_call.1
= control target key start
LH: loop header
LB: loop body
LE: loop exit
PB: predicated region body
PF: predicated region fallthrough
CT: control target
= control target key end

     0   :  { %6 = vsyncpa [#allocation3], 0  ;;  %s124_s0 = inlined_call_operand.hbm [shape: f32[16,128], index: 0, kind: input, shape index: {}, may-alias: {0,1}]   ;;  %s125_s1 = inlined_call_operand.hbm [shape: f32[16,128], index: 1, kind: output, shape index: {}, may-alias: {0,1}]  }
   0x1   :  { %7 = vsyncpa [#allocation4], 0  ;;  %s12_s8 = sshll.u32 %s124_s0, 4  ;;  %s104_s9 = smov [#allocation2]   ;;  %s13_s8 = int_to_ptr.hbm [resolvable:$true] %s12_s8 }
   0x2   :  { %s14_s10 = sshll.u32 %s104_s9, 4  ;;  %s105_s11 = smov 128   ;;  %s15_s10 = int_to_ptr.vmem [resolvable:$true] %s14_s10 }
   0x3   :  { %s106_s12 = smov 8  }
   0x4   :  { %20 = dma.hbm_to_vmem [thread:$0]  %s13_s8, 256, %s15_s10, [#allocation3], %s105_s11, %s105_s11, %s106_s12  }
   0x5   :  { %100 = dma.done.wait [#allocation3], 256  }
   0x6   :  { %101 = vsyncadd [#allocation3], 4294967040  ;;  %s107_s13 = smov [#allocation5]   ;;  %s35_s17 = sshll.u32 %s125_s1, 4  ;;  %v25_v0 = vld [vmem:[#allocation2] sm:$0xff]  ;;  %v26_v1 = vld [vmem:[#allocation2 + $0x8] sm:$0xff]  ;;  %s36_s17 = int_to_ptr.hbm [resolvable:$true] %s35_s17 }
   0x7   :  { %s33_s14 = sshll.u32 %s107_s13, 4  ;;  %27 = vst [vmem:[#allocation5] sm:$0xff] %v25_v0  ;;  %s34_s14 = int_to_ptr.vmem [resolvable:$true] %s33_s14 }
   0x8   :  { %28 = vst [vmem:[#allocation5 + $0x8] sm:$0xff] %v26_v1 }
   0x9   :  { %41 = dma.vmem_to_hbm [thread:$0]  %s34_s14, 256, %s36_s17, [#allocation4], %s105_s11, %s105_s11, %s106_s12  }
   0xa   :  { %102 = dma.done.wait [#allocation4], 256  }
   0xb   :  { %103 = vsyncadd [#allocation4], 4294967040 }
   0xc   :  { %46 = vsyncpa [#allocation3], 1 }
   0xd   :  { %47 = vsyncpa [#allocation4], 1 }

</bundles_post_ra>
